<compile_context>
chip_gen: v7x
topology: tpu7x:2x2x1
jax: 0.10.0
libtpu: 0.0.40
codegen_flags: <defaults>
</compile_context>

<pallas_src>
import functools

import numpy as np
import jax
import jax.numpy as jnp
from jax import lax
from jax.experimental import pallas as pl
from jax.experimental.pallas import tpu as pltpu

LANES = 128


def _cdiv(a, b):
    return (a + b - 1) // b


def _round_up(a, m):
    return _cdiv(a, m) * m


def _choose_tiling(rows, target_rows, sub):
    """Pick (row_tile, num_tiles, tail_rows) with minimal waste.

    tail_rows == 0  -> tiles divide `rows` exactly (or a single full-dim tile).
    tail_rows  > 0  -> the last tile is partial; the kernel masks it.
    """
    target = max(sub, _round_up(int(target_rows), sub))
    if rows <= target:
        return rows, 1, 0                       # one full-extent block (always legal)
    nt = _cdiv(rows, target)
    tr = _round_up(_cdiv(rows, nt), sub)        # sublane-tile aligned row tile
    nt = _cdiv(rows, tr)
    tail = rows - (nt - 1) * tr
    if tail == tr:
        tail = 0
    return tr, nt, tail


def _ssd_kernel(x_ref, y_ref, o_ref, *, tr, nt, nh, tail, acc_rows):
    """Accumulate per-sample partial sums of (x - y)^2.

    x_ref / y_ref : (1, tr, 128) input tiles in their native dtype.
    o_ref         : (1, 1, acc_rows, 128) f32 accumulator, resident across the
                    row-tile (reduction) grid axis.
    """
    h = pl.program_id(1)
    t = pl.program_id(2)

    @pl.when(t == 0)
    def _init():
        o_ref[...] = jnp.zeros_like(o_ref)

    # Cast on the vreg; keeps HBM traffic at the input's native width.
    d = x_ref[...].astype(jnp.float32) - y_ref[...].astype(jnp.float32)

    if tail:
        # Ragged last row-tile: the edge block is partial, so rows >= `tail`
        # hold unspecified data -- zero them out (select, so NaNs don't leak).
        g = h * nh + t                                  # global row-tile index
        limit = jnp.where(g == nt - 1, tail, tr)
        row = lax.broadcasted_iota(jnp.int32, d.shape, 1)
        d = jnp.where(row < limit, d, 0.0)

    sq = d * d
    if acc_rows == tr:
        # Single (or non-8-multiple full-extent) tile: plain element-wise add.
        o_ref[...] += sq.reshape(1, 1, tr, LANES)
    else:
        # Fold groups of `acc_rows` sublanes with pure VPU adds (the reshape is
        # tile-aligned, so no relayout); no XLU reduce, no masked stores.
        o_ref[...] += jnp.sum(
            sq.reshape(1, tr // acc_rows, acc_rows, LANES), axis=1, keepdims=True)


def minus_psnr_loss(pred, target, *, loss_weight=1.0, toY=False, block_rows=4096):
    """Faithful port of MinusPSNRLoss.forward (reduction='mean')."""
    x = jnp.asarray(pred)
    y = jnp.asarray(target)
    assert x.ndim == 4 and x.shape == y.shape

    # Keep half-precision inputs as-is (HBM bandwidth dominates this kernel);
    # only normalize mismatched / non-float / >32-bit dtypes.
    if x.dtype != y.dtype:
        ct = jnp.promote_types(x.dtype, y.dtype)
        x, y = x.astype(ct), y.astype(ct)
    if (not jnp.issubdtype(x.dtype, jnp.floating)) or x.dtype.itemsize > 4:
        x, y = x.astype(jnp.float32), y.astype(jnp.float32)

    # 255 scale is folded into the epilogue: (255*(x-y))^2 == 255^2 * (x-y)^2.
    diff_scale_sq = 255.0 ** 2
    if toY:
        # TODO(synk): fuse the 3-channel -> Y mix into the kernel to avoid the
        # extra HBM pass; the default/tested path is toY=False.
        coef = jnp.asarray([65.481, 128.553, 24.966], jnp.float32).reshape(1, 3, 1, 1)
        x = ((x.astype(jnp.float32) * 255.0) * coef).sum(axis=1, keepdims=True) + 16.0
        y = ((y.astype(jnp.float32) * 255.0) * coef).sum(axis=1, keepdims=True) + 16.0
        x, y = x / 255.0, y / 255.0
        diff_scale_sq = 1.0

    B, C, H, W = x.shape
    N = C * H * W
    itemsize = jnp.dtype(x.dtype).itemsize
    sub = {4: 8, 2: 16, 1: 32}[itemsize]        # sublane multiple for this dtype

    # Lane-dense flattened layout (B, rows, 128); free reshape when N % 128 == 0.
    xf = x.reshape(B, N)
    yf = y.reshape(B, N)
    n128 = _round_up(N, LANES)
    if n128 != N:
        # Tiny (<128 elems/sample) zero pad; zeros contribute 0 to the SSD.
        xf = jnp.pad(xf, ((0, 0), (0, n128 - N)))
        yf = jnp.pad(yf, ((0, 0), (0, n128 - N)))
    rows = n128 // LANES
    x3 = xf.reshape(B, rows, LANES)
    y3 = yf.reshape(B, rows, LANES)

    tr, nt, tail = _choose_tiling(rows, block_rows, sub)
    acc_rows = 8 if tr % 8 == 0 else tr

    # Let v7x's second TensorCore help when B alone cannot balance the cores.
    split = 2 if (B % 2 == 1 and nt >= 2 and nt % 2 == 0) else 1
    nh = nt // split

    kern = functools.partial(_ssd_kernel, tr=tr, nt=nt, nh=nh, tail=tail,
                             acc_rows=acc_rows)

    block_in_bytes = tr * LANES * itemsize
    vmem_limit = int(min(max(32 * 1024 * 1024, 6 * block_in_bytes + (1 << 20)),
                         64 * 1024 * 1024))

    cost = pl.CostEstimate(
        flops=int(3 * B * rows * LANES),
        transcendentals=0,
        bytes_accessed=int(2 * B * rows * LANES * itemsize
                           + B * split * acc_rows * LANES * 4),
    )

    out = pl.pallas_call(
        kern,
        out_shape=jax.ShapeDtypeStruct((B, split, acc_rows, LANES), jnp.float32),
        grid=(B, split, nh),
        in_specs=[
            pl.BlockSpec((1, tr, LANES), lambda b, h, t: (b, h * nh + t, 0)),
            pl.BlockSpec((1, tr, LANES), lambda b, h, t: (b, h * nh + t, 0)),
        ],
        out_specs=pl.BlockSpec((1, 1, acc_rows, LANES),
                               lambda b, h, t: (b, h, 0, 0)),
        compiler_params=pltpu.CompilerParams(
            dimension_semantics=("parallel", "parallel", "arbitrary"),
            vmem_limit_bytes=vmem_limit,
        ),
        cost_estimate=cost,
    )(x3, y3)

    # Tiny O(B) epilogue in plain JAX.
    ssd = jnp.sum(out, axis=(1, 2, 3))                   # (B,) sum of squared diffs
    mse = ssd * (diff_scale_sq / float(N))               # mean over (C, H, W)
    scale = 10.0 / float(np.log(10.0))
    return loss_weight * (100.0 - scale * jnp.mean(jnp.log(mse + 1e-8)))


def _ref_minus_psnr_loss(pred, target, *, loss_weight=1.0, toY=False):
    """Pure-JAX reference, a direct port of MinusPSNRLoss.forward."""
    pred = jnp.asarray(pred, jnp.float32) * 255.0
    target = jnp.asarray(target, jnp.float32) * 255.0
    if toY:
        coef = jnp.asarray([65.481, 128.553, 24.966], jnp.float32).reshape(1, 3, 1, 1)
        pred = (pred * coef).sum(axis=1, keepdims=True) + 16.0
        target = (target * coef).sum(axis=1, keepdims=True) + 16.0
        pred, target = pred / 255.0, target / 255.0
    mse = jnp.mean((pred - target) ** 2, axis=(1, 2, 3))
    scale = 10.0 / float(np.log(10.0))
    return loss_weight * (100.0 - scale * jnp.mean(jnp.log(mse + 1e-8)))


if __name__ == "__main__":
    key = jax.random.PRNGKey(0)

    cases = [
        dict(shape=(2, 4, 16, 16), kwargs={}),                   # default path
        dict(shape=(2, 3, 40, 32), kwargs=dict(block_rows=8)),   # ragged tail -> in-kernel mask
        dict(shape=(1, 4, 32, 32), kwargs=dict(block_rows=8)),   # B=1 -> 2-way core split
        dict(shape=(2, 3, 16, 16), kwargs=dict(toY=True)),       # Y-channel branch
    ]

    for c in cases:
        key, kx, ky = jax.random.split(key, 3)
        X = jax.random.uniform(kx, c["shape"], dtype=jnp.float32)
        Y = jax.random.uniform(ky, c["shape"], dtype=jnp.float32)

        got = jax.block_until_ready(minus_psnr_loss(X, Y, **c["kwargs"]))
        ref = jax.block_until_ready(_ref_minus_psnr_loss(
            X, Y, toY=c["kwargs"].get("toY", False)))

        err = abs(float(got) - float(ref))
        assert err < 1e-3 * max(1.0, abs(float(ref))), (c, float(got), float(ref), err)

    print("KERNEL_OK")
</pallas_src>

<mosaic_0001>
module attributes {stable_mosaic.version = 11 : i64} {
  func.func @_ssd_kernel(%arg0: i32, %arg1: i32, %arg2: i32, %arg3: memref<1x8x128xf32, #tpu.memory_space<vmem>>, %arg4: memref<1x8x128xf32, #tpu.memory_space<vmem>>, %arg5: memref<1x1x8x128xf32, #tpu.memory_space<vmem>>) attributes {dimension_semantics = [#tpu.dimension_semantics<parallel>, #tpu.dimension_semantics<parallel>, #tpu.dimension_semantics<arbitrary>], iteration_bounds = array<i64: 2, 1, 1>, scalar_prefetch = 0 : i64, scratch_operands = 0 : i64, tpu.core_type = #tpu.core_type<tc>, window_params = [{transform_indices = @transform_0, window_bounds = array<i64: 1, 8, 128>}, {transform_indices = @transform_1, window_bounds = array<i64: 1, 8, 128>}, {transform_indices = @transform_2, window_bounds = array<i64: 1, 1, 8, 128>}]} {
    %c0_i32 = arith.constant 0 : i32
    %0 = arith.cmpi eq, %arg2, %c0_i32 : i32
    %1 = arith.extui %0 : i1 to i32
    %c0_i32_0 = arith.constant 0 : i32
    %2 = arith.cmpi ne, %1, %c0_i32_0 : i32
    scf.if %2 {
      %cst = arith.constant 0.000000e+00 : f32
      %11 = vector.broadcast %cst : f32 to vector<1x1x8x128xf32>
      %c0_14 = arith.constant 0 : index
      %c0_15 = arith.constant 0 : index
      %c0_16 = arith.constant 0 : index
      %c0_17 = arith.constant 0 : index
      %12 = vector.load %arg5[%c0_14, %c0_15, %c0_16, %c0_17] : memref<1x1x8x128xf32, #tpu.memory_space<vmem>>, vector<1x1x8x128xf32>
      tpu.vector_store %arg5[%c0_14, %c0_15, %c0_16, %c0_17], %11 {strides = array<i32>} : memref<1x1x8x128xf32, #tpu.memory_space<vmem>>, vector<1x1x8x128xf32>,
    } else {
    }
    %c0 = arith.constant 0 : index
    %c0_1 = arith.constant 0 : index
    %c0_2 = arith.constant 0 : index
    %3 = vector.load %arg3[%c0, %c0_1, %c0_2] : memref<1x8x128xf32, #tpu.memory_space<vmem>>, vector<1x8x128xf32>
    %c0_3 = arith.constant 0 : index
    %c0_4 = arith.constant 0 : index
    %c0_5 = arith.constant 0 : index
    %4 = vector.load %arg4[%c0_3, %c0_4, %c0_5] : memref<1x8x128xf32, #tpu.memory_space<vmem>>, vector<1x8x128xf32>
    %5 = arith.subf %3, %4 : vector<1x8x128xf32>
    %6 = arith.mulf %5, %5 : vector<1x8x128xf32>
    %c0_6 = arith.constant 0 : index
    %c0_7 = arith.constant 0 : index
    %c0_8 = arith.constant 0 : index
    %c0_9 = arith.constant 0 : index
    %7 = vector.load %arg5[%c0_6, %c0_7, %c0_8, %c0_9] : memref<1x1x8x128xf32, #tpu.memory_space<vmem>>, vector<1x1x8x128xf32>
    %8 = vector.shape_cast %6 : vector<1x8x128xf32> to vector<1x1x8x128xf32>
    %9 = arith.addf %7, %8 : vector<1x1x8x128xf32>
    %c0_10 = arith.constant 0 : index
    %c0_11 = arith.constant 0 : index
    %c0_12 = arith.constant 0 : index
    %c0_13 = arith.constant 0 : index
    %10 = vector.load %arg5[%c0_10, %c0_11, %c0_12, %c0_13] : memref<1x1x8x128xf32, #tpu.memory_space<vmem>>, vector<1x1x8x128xf32>
    tpu.vector_store %arg5[%c0_10, %c0_11, %c0_12, %c0_13], %9 {strides = array<i32>} : memref<1x1x8x128xf32, #tpu.memory_space<vmem>>, vector<1x1x8x128xf32>,
    return
  }
  func.func @transform_0(%arg0: i32, %arg1: i32, %arg2: i32) -> (i32, i32, i32) {
    %c1_i32 = arith.constant 1 : i32
    %0 = arith.muli %arg1, %c1_i32 : i32
    %1 = arith.addi %0, %arg2 : i32
    %c0_i32 = arith.constant 0 : i32
    %c0_i32_0 = arith.constant 0 : i32
    return %arg0, %1, %c0_i32 : i32, i32, i32
  }
  func.func @transform_1(%arg0: i32, %arg1: i32, %arg2: i32) -> (i32, i32, i32) {
    %c1_i32 = arith.constant 1 : i32
    %0 = arith.muli %arg1, %c1_i32 : i32
    %1 = arith.addi %0, %arg2 : i32
    %c0_i32 = arith.constant 0 : i32
    %c0_i32_0 = arith.constant 0 : i32
    return %arg0, %1, %c0_i32 : i32, i32, i32
  }
  func.func @transform_2(%arg0: i32, %arg1: i32, %arg2: i32) -> (i32, i32, i32, i32) {
    %c0_i32 = arith.constant 0 : i32
    %c0_i32_0 = arith.constant 0 : i32
    %c0_i32_1 = arith.constant 0 : i32
    return %arg0, %arg1, %c0_i32, %c0_i32_0 : i32, i32, i32, i32
  }
}

</mosaic_0001>

<bundles_post_ra>
// kernel: tpu_custom_call.1
= control target key start
LH: loop header
LB: loop body
LE: loop exit
PB: predicated region body
PF: predicated region fallthrough
CT: control target
= control target key end

     0   :  { %7 = vsyncpa [#allocation3], 0  ;;  %s837_s0 = inlined_call_operand.hbm [shape: f32[2,8,128], index: 0, kind: input, shape index: {}]   ;;  %s838_s1 = inlined_call_operand.hbm [shape: f32[2,8,128], index: 1, kind: input, shape index: {}]   ;;  %s839_s2 = inlined_call_operand.hbm [shape: f32[2,1,8,128], index: 2, kind: output, shape index: {}]  }
   0x1   :  { %9 = vsyncpa [#allocation3 + $0x1], 0 }
   0x2   :  { %10 = vsyncpa [#allocation6], 0 }
   0x3   :  { %12 = vsyncpa [#allocation6 + $0x1], 0 }
   0x4   :  { %13 = vsyncpa [#allocation4], 0 }
   0x5   :  { %15 = vsyncpa [#allocation4 + $0x1], 0  ;;  %s617_s9 = smov 0   ;;  %s619_s10 = smov 0  }
   0x6   :  { %s621_s11 = smov 0   ;;  %s623_s12 = smov 0  }
   0x7   :  { %s625_s13 = smov 0   ;;  %s627_s14 = smov 0  }
   0x8 LB: > { %s367_s15 = sadd.s32 4294967295, %s597_s14   ;;  %s368_s16 = sadd.s32 4294967294, %s597_s14   ;;  %s597_s14 = sphi %s627_s14, %s21_s14   ;;  %s593_s13 = sphi %s625_s13, %s859_s13   ;;  %s589_s12 = sphi %s623_s12, %s858_s12   ;;  %s585_s11 = sphi %s621_s11, %s857_s11   ;;  %s581_s10 = sphi %s619_s10, %s856_s10   ;;  %s577_s9 = sphi %s617_s9, %s855_s9  }
   0x9   : > { %s40_s17 = sadd.s32 1, %s593_s13  ;;  %s51_s18 = sadd.s32 1, %s585_s11 }
   0xa   : > { %p42_p0 = scmp.ge.s32.totalorder %s40_s17, 2  ;;  %p58_p1 = scmp.ne.s32.totalorder %s585_s11, %s581_s10 }
   0xb   : > { %p59_p2 = scmp.eq.s32.totalorder %s597_s14, 0  ;;  %p64_p3 = scmp.ne.s32.totalorder %s581_s10, %s577_s9 }
   0xc   : > { %s861_s17 = smov (%p42_p0, %s40_s17), 0  ;;  %p65_p5 = scmp.eq.s32.totalorder %s367_s15, 0 }
   0xd   : > { %p658_p4 = por %p59_p2, %p58_p1  ;;  %s46_s20 = ssub.s32 %s593_s13, %s861_s17 }
   0xe   : > { %p120_p6 = scmp.eq.s32.totalorder %s367_s15, 1  ;;  %p49_p7 = scmp.eq.s32.totalorder %s46_s20, 0 }
   0xf   : > { %p664_p8 = por %p65_p5, %p64_p3  ;;  %p126_p10 = scmp.eq.s32.totalorder %s368_s16, 1 }
  0x10   : > { %p668_p9 = por %p120_p6, %p58_p1  ;;  %p400_p13 = scmp.lt.s32.totalorder %s597_s14, 2 }
  0x11   : > { %s843_s21 = scalar_select %p664_p8, 1, 0 }
  0x12   : > { %s844_s22 = scalar_select %p668_p9, 1, 0 }
  0x13   : > { %s673_s23 = scalar_select %p49_p7, %s585_s11, %s51_s18  }
  0x14   : > { %p675_p11 = por %p126_p10, %p64_p3  ;;  %s682_s25 = sand.u32 1, %s585_s11  }
  0x15   : > { %s371_s26 = sshll.u32 %s682_s25, 3  ;;  %s372_s27 = sshll.u32 %s593_s13, 7 }
  0x16   : > { %s845_s24 = scalar_select %p675_p11, 1, 0 }
  0x17   : > { %s691_s30 = scalar_lea.hbm %s837_s0, %s372_s27  ;;  %s150_s3 = scalar_lea.vmem [#allocation2], %s371_s26 }
  0x18   : > { %s159_s4 = sshll.u32 %s150_s3, 4  ;;  %p699_p0 = pnand %p400_p13, %p658_p4  ;;  %s695_s4 = int_to_ptr.vmem [resolvable:$true] %s159_s4 }
  0x19   : > { %s147_s6 = scalar_lea.sflag [#allocation3], %s682_s25  ;;  %s451_s7 = scalar_lea.hbm %s691_s30, 128 }
  0x1a   : > { %p452_p3 = scmp.ne.s32.totalorder %s691_s30, %s451_s7  ;;  %p453_p5 = pneg %p699_p0 }
  0x1b   : > { %s456_s16 = scalar_lea.hbm %s837_s0, 256  ;;  %p457_p4 = scmp.lt.u32.totalorder %s691_s30, %s837_s0 }
  0x1c   : > { %p454_p6 = pnand %p453_p5, %p452_p3  ;;  %p458_p10 = scmp.lt.u32.totalorder %s456_s16, %s451_s7 }
  0x1d   : > { %p460_p12 = scmp.lt.u32.totalorder %s451_s7, %s691_s30 }
  0x1e   : > { %p455_p7 = pneg %p454_p6  ;;  %p459_p13 = por %p458_p10, %p457_p4 }
  0x20   : > { %p461_p1 = por %p460_p12, %p459_p13 }
  0x22   : > { %p462_p2 = pnand %p461_p1, %p455_p7 }
  0x24   : > { %465 = shalt.err (!%p462_p2)
}
  0x25   : > { %s466_s20 = scalar_lea.vmem %s695_s4, 128  ;;  %s599_s28 = smov [#allocation2]  }
  0x26   : > { %p467_p3 = scmp.ne.s32.totalorder %s695_s4, %s466_s20  ;;  %s471_s29 = sshll.u32 %s599_s28, 4  ;;  %s472_s29 = int_to_ptr.vmem [resolvable:$false] %s471_s29 }
  0x27   : > { %s473_s3 = scalar_lea.vmem %s472_s29, 256  ;;  %p474_p9 = scmp.lt.s32.totalorder %s695_s4, %s472_s29 }
  0x28   : > { %p469_p6 = pnand %p467_p3, %p453_p5  ;;  %p475_p4 = scmp.lt.s32.totalorder %s473_s3, %s466_s20 }
  0x2a   : > { %p470_p11 = pneg %p469_p6  ;;  %p476_p10 = por %p475_p4, %p474_p9 }
  0x2c   : > { %p477_p12 = pnand %p476_p10, %p470_p11 }
  0x2e   : > { %480 = shalt.err (!%p477_p12)
}
  0x2f   : > { %392 = dma.hbm_to_vmem [thread:$0]  (!%p699_p0), %s691_s30, 128, %s695_s4, %s147_s6  }
  0x30   : > { %p847_p1 = scmp.lt.s32.totalorder %s597_s14, 3  ;;  %p848_p2 = scmp.ge.s32.totalorder %s597_s14, 1 }
  0x31   : > { %s744_s16 = scalar_lea.hbm %s838_s1, %s372_s27  ;;  %s170_s18 = scalar_lea.vmem [#allocation5], %s371_s26 }
  0x32   : > { %p735_p7 = pnand %p848_p2, %p847_p1  ;;  %s179_s19 = sshll.u32 %s170_s18, 4  ;;  %s180_s19 = int_to_ptr.vmem [resolvable:$true] %s179_s19 }
  0x33   : > { %s167_s30 = scalar_lea.sflag [#allocation6], %s682_s25  ;;  %s481_s4 = scalar_lea.hbm %s744_s16, 128 }
  0x34   : > { %s849_s7 = scalar_select %p735_p7, 1, 0 }
  0x35   : > { %p482_p9 = scmp.ne.s32.totalorder %s744_s16, %s481_s4  ;;  %s486_s27 = scalar_lea.hbm %s838_s1, 256 }
  0x36   : > { %p487_p3 = scmp.lt.u32.totalorder %s744_s16, %s838_s1  ;;  %p488_p6 = scmp.lt.u32.totalorder %s486_s27, %s481_s4 }
  0x37   : > { %p484_p11 = pnand %p482_p9, %p453_p5  ;;  %p490_p10 = scmp.lt.u32.totalorder %s481_s4, %s744_s16 }
  0x38   : > { %p489_p4 = por %p488_p6, %p487_p3 }
  0x39   : > { %p485_p13 = pneg %p484_p11 }
  0x3a   : > { %p491_p12 = por %p490_p10, %p489_p4 }
  0x3c   : > { %p492_p1 = pnand %p491_p12, %p485_p13 }
  0x3e   : > { %495 = shalt.err (!%p492_p1)
}
  0x3f   : > { %s496_s25 = scalar_lea.vmem %s180_s19, 128  ;;  %s600_s26 = smov [#allocation5]  }
  0x40   : > { %p497_p2 = scmp.ne.s32.totalorder %s180_s19, %s496_s25  ;;  %s501_s3 = sshll.u32 %s600_s26, 4  ;;  %s502_s3 = int_to_ptr.vmem [resolvable:$false] %s501_s3 }
  0x41   : > { %s503_s8 = scalar_lea.vmem %s502_s3, 256  ;;  %p504_p8 = scmp.lt.s32.totalorder %s180_s19, %s502_s3 }
  0x42   : > { %p499_p9 = pnand %p497_p2, %p453_p5  ;;  %p505_p7 = scmp.lt.s32.totalorder %s503_s8, %s496_s25 }
  0x44   : > { %p500_p11 = pneg %p499_p9  ;;  %p506_p3 = por %p505_p7, %p504_p8 }
  0x46   : > { %p507_p6 = pnand %p506_p3, %p500_p11 }
  0x48   : > { %510 = shalt.err (!%p507_p6)
}
  0x49   : > { %395 = dma.hbm_to_vmem [thread:$0]  (!%p699_p0), %s744_s16, 128, %s180_s19, %s167_s30  }
  0x4a   : > { %p850_p13 = scmp.ne.s32.totalorder %s849_s7, 0 }
  0x4b   : > { %s771_s15 = sand.u32 (!%p850_p13), 1, %s581_s10   ;;  %p851_p5 = scmp.ne.s32.totalorder (!%p850_p13), %s843_s21, 0 }
  0x4c   : > { %188 = sbr.rel (%p850_p13) target bundleno = 112 (0x70), region = 28  ;;  %s376_s18 = sshll.u32 (!%p850_p13), %s771_s15, 3 }
  0x4d   : > { %s191_s4 = scalar_lea.sflag (!%p850_p13), [#allocation3], %s771_s15  ;;  %s194_s6 = scalar_lea.vmem (!%p850_p13), [#allocation2], %s376_s18 }
  0x53   : > { %564 = dma.done.wait (%p851_p5), %s191_s4, 128  }
  0x54   : > { %566 = vsyncadd (%p851_p5), %s191_s4, 4294967168  ;;  %s200_s5 = scalar_lea.sflag [#allocation6], %s771_s15  ;;  %s203_s16 = scalar_lea.vmem [#allocation5], %s376_s18 }
  0x55   : > { %568 = dma.done.wait (%p851_p5), %s200_s5, 128  }
  0x56   : > { %570 = vsyncadd (%p851_p5), %s200_s5, 4294967168  ;;  %v236_v0 = vld [vmem:[%s194_s6] sm:$0xff]  ;;  %v237_v1 = vld [vmem:[%s203_s16] sm:$0xff]  ;;  %s380_s7 = sshll.u32 %s589_s12, 7  ;;  %s228_s19 = scalar_lea.vmem [#allocation7], %s376_s18 }
  0x57   : > { %v238_v2 = vsub.f32 %v236_v0, %v237_v1  ;;  %s258_s30 = sshll.u32 %s228_s19, 4  ;;  %s788_s28 = scalar_lea.hbm %s839_s2, %s380_s7  ;;  %s790_s30 = int_to_ptr.vmem [resolvable:$true] %s258_s30 }
  0x58   : > { %s244_s21 = scalar_lea.sflag [#allocation4], %s771_s15  ;;  %s511_s29 = scalar_lea.vmem %s790_s30, 128 }
  0x59   : > { %v239_v3 = vmul.f32 %v238_v2, %v238_v2  ;;  %p512_p8 = scmp.ne.s32.totalorder %s790_s30, %s511_s29  ;;  %p852_p0 = scmp.ne.s32.totalorder %s844_s22, 0 }
  0x5a   : > { %s601_s12 = smov [#allocation7]  }
  0x5b   : > { %242 = vst [vmem:[%s228_s19] sm:$0xff] %v239_v3  ;;  %p513_p7 = pnand %p512_p8, %p852_p0  ;;  %s515_s25 = sshll.u32 %s601_s12, 4  ;;  %s516_s25 = int_to_ptr.vmem [resolvable:$false] %s515_s25 }
  0x5c   : > { %s517_s26 = scalar_lea.vmem %s516_s25, 256  ;;  %p518_p10 = scmp.lt.s32.totalorder %s790_s30, %s516_s25 }
  0x5d   : > { %p514_p4 = pneg %p513_p7  ;;  %p519_p12 = scmp.lt.s32.totalorder %s517_s26, %s511_s29 }
  0x5f   : > { %p520_p1 = por %p519_p12, %p518_p10 }
  0x61   : > { %p521_p2 = pnand %p520_p1, %p514_p4 }
  0x63   : > { %524 = shalt.err (!%p521_p2)
}
  0x64   : > { %s525_s3 = scalar_lea.hbm %s788_s28, 128  ;;  %s529_s18 = scalar_lea.hbm %s839_s2, 256 }
  0x65   : > { %p526_p9 = scmp.ne.s32.totalorder %s788_s28, %s525_s3  ;;  %p530_p6 = scmp.lt.u32.totalorder %s788_s28, %s839_s2 }
  0x66   : > { %p531_p13 = scmp.lt.u32.totalorder %s529_s18, %s525_s3  ;;  %p533_p8 = scmp.lt.u32.totalorder %s525_s3, %s788_s28 }
  0x67   : > { %p527_p11 = pnand %p526_p9, %p852_p0 }
  0x68   : > { %p532_p5 = por %p531_p13, %p530_p6 }
  0x69   : > { %p528_p3 = pneg %p527_p11 }
  0x6a   : > { %p534_p7 = por %p533_p8, %p532_p5 }
  0x6c   : > { %p535_p4 = pnand %p534_p7, %p528_p3 }
  0x6e   : > { %538 = shalt.err (!%p535_p4)
}
  0x6f   : > { %387 = dma.vmem_to_hbm [thread:$0]  (%p852_p0), %s790_s30, 128, %s788_s28, %s244_s21  }
  0x70 PF: > { %s270_s5 = sand.u32 1, %s577_s9   ;;  %p853_p10 = scmp.ne.s32.totalorder %s845_s24, 0 }
  0x71   : > { %p854_p12 = scmp.ge.s32.totalorder %s597_s14, 2  ;;  %s271_s16 = scalar_lea.sflag [#allocation4], %s270_s5 }
  0x73   : > { %p397_p1 = pnand %p854_p12, %p853_p10 }
  0x75   : > { %572 = dma.done.wait (!%p397_p1), %s271_s16, 128  }
  0x76   : > { %574 = vsyncadd (!%p397_p1), %s271_s16, 4294967168  ;;  %s21_s14 = sadd.s32 1, %s597_s14   ;;  %s855_s9 = smov %s581_s10 }
  0x77   : > { %p18_p2 = scmp.ge.s32.totalorder %s21_s14, 4   ;;  %s856_s10 = smov %s585_s11 }
  0x78   : > { %s857_s11 = smov %s673_s23  ;;  %s858_s12 = smov %s593_s13 }
  0x79   : > { %s859_s13 = smov %s861_s17  ;;  %20 = sbr.rel (!%p18_p2) target bundleno = 8 (0x8), region = 90 }
  0x80   :  { %276 = vsyncpa [#allocation3], 1 }
  0x81   :  { %278 = vsyncpa [#allocation3 + $0x1], 1 }
  0x82   :  { %279 = vsyncpa [#allocation6], 1 }
  0x83   :  { %281 = vsyncpa [#allocation6 + $0x1], 1 }
  0x84   :  { %282 = vsyncpa [#allocation4], 1 }
  0x85   :  { %284 = vsyncpa [#allocation4 + $0x1], 1 }

</bundles_post_ra>
